<compile_context>
chip_gen: v7x
topology: tpu7x:2x2x1
jax: 0.10.0
libtpu: 0.0.40
codegen_flags: <defaults>
</compile_context>

<pallas_src>
import math

import jax
import jax.numpy as jnp
from jax.experimental import pallas as pl
from jax.experimental.pallas import tpu as pltpu


# ----------------------------------------------------------------------------
# Pallas kernels (one per phase, all row-tiled and row-parallel)
# ----------------------------------------------------------------------------
def xw1_kernel(x_ref, w1_ref, s1_ref):
    """Phase 0: S1 tile = X_tile @ W1  (f32 accumulate, stored bf16)."""
    s1_ref[...] = jnp.dot(
        x_ref[...], w1_ref[...], preferred_element_type=jnp.float32
    ).astype(s1_ref.dtype)


def layer1_kernel(a1_ref, s1_ref, w2_ref, b1_ref, s2_ref):
    """Phase 1: S2 tile = relu(A1_tile @ S1 + b1) @ W2.

    a1_ref : (TM, N_pad)    bf16  streamed row tile
    s1_ref : (N_pad, H_pad) bf16  resident (Buffered(1))
    w2_ref : (H_pad, C_pad) bf16  resident
    b1_ref : (1, H_pad)     f32   resident
    s2_ref : (TM, C_pad)    bf16  output row tile
    """
    h = jnp.dot(a1_ref[...], s1_ref[...], preferred_element_type=jnp.float32)
    h = jnp.maximum(h + b1_ref[...], 0.0)
    # dropout (eval mode) = identity
    # support-first association keeps the wide N-contraction down to C_pad
    # output columns in phase 2.
    s2_ref[...] = jnp.dot(
        h.astype(jnp.bfloat16), w2_ref[...], preferred_element_type=jnp.float32
    ).astype(s2_ref.dtype)


def layer2_kernel(a2_ref, s2_ref, b2_ref, out_ref):
    """Phase 2: out tile = A2_tile @ S2 + b2."""
    out_ref[...] = (
        jnp.dot(a2_ref[...], s2_ref[...], preferred_element_type=jnp.float32)
        + b2_ref[...]
    )


# ----------------------------------------------------------------------------
# Wrapper helpers
# ----------------------------------------------------------------------------
def _round_up(x, m):
    return ((x + m - 1) // m) * m


def _pick_row_tile(n_pad, row_tile):
    """Largest multiple of 128 that divides n_pad and is <= row_tile."""
    best = 128
    t = 256
    while t <= min(row_tile, n_pad):
        if n_pad % t == 0:
            best = t
        t += 128
    return best


def _pad2(a, rows, cols, dtype):
    a = jnp.asarray(a, dtype)
    return jnp.pad(a, ((0, rows - a.shape[0]), (0, cols - a.shape[1])))


def _resident(shape):
    """Grid-invariant operand: constant block index, single-buffered."""
    return pl.BlockSpec(shape, lambda i: (0, 0), pipeline_mode=pl.Buffered(1))


def _vmem_limit(working_set_bytes):
    """2x headroom over the estimated working set, clamped to a sane range."""
    return int(min(max(2 * working_set_bytes + (4 << 20), 16 << 20), 100 << 20))


# ----------------------------------------------------------------------------
# Forward
# ----------------------------------------------------------------------------
def wgcn_forward(A1, A2, x, w1, b1, w2, b2, *, row_tile=512):
    """WGCN forward (eval mode).  A1 / A2 are the dense per-layer adjacencies."""
    N, nfeat = x.shape
    nhid = w1.shape[1]
    nclass = w2.shape[1]

    # Pad the node dim to 128 only (adjacencies are N_pad^2: over-padding N to
    # a multiple of the tile wastes HBM bandwidth on a bandwidth-bound kernel);
    # the row tile is chosen as a divisor of N_pad instead.
    N_pad = _round_up(N, 128)
    F_pad = _round_up(nfeat, 128)
    H_pad = _round_up(nhid, 128)
    C_pad = _round_up(nclass, 128)
    TM = _pick_row_tile(N_pad, int(row_tile))
    grid = (N_pad // TM,)

    bf = jnp.bfloat16
    A1p = _pad2(A1, N_pad, N_pad, bf)
    A2p = _pad2(A2, N_pad, N_pad, bf)
    xp = _pad2(x, N_pad, F_pad, bf)
    w1p = _pad2(w1, F_pad, H_pad, bf)
    w2p = _pad2(w2, H_pad, C_pad, bf)
    b1p = _pad2(jnp.reshape(b1, (1, -1)), 1, H_pad, jnp.float32)
    b2p = _pad2(jnp.reshape(b2, (1, -1)), 1, C_pad, jnp.float32)

    # ---- phase 0: S1 = X @ W1 (computed exactly once, shared by all tiles) --
    ws0 = (2 * TM * F_pad * 2) + (F_pad * H_pad * 2) + (2 * TM * H_pad * 2)
    s1 = pl.pallas_call(
        xw1_kernel,
        out_shape=jax.ShapeDtypeStruct((N_pad, H_pad), bf),
        grid_spec=pltpu.PrefetchScalarGridSpec(
            num_scalar_prefetch=0,
            grid=grid,
            in_specs=[
                pl.BlockSpec((TM, F_pad), lambda i: (i, 0)),   # X row tile
                _resident((F_pad, H_pad)),                     # W1
            ],
            out_specs=pl.BlockSpec((TM, H_pad), lambda i: (i, 0)),
        ),
        compiler_params=pltpu.CompilerParams(
            dimension_semantics=("parallel",),
            vmem_limit_bytes=_vmem_limit(ws0)),
        cost_estimate=pl.CostEstimate(
            flops=2 * N_pad * F_pad * H_pad,
            transcendentals=0,
            bytes_accessed=(N_pad * F_pad + F_pad * H_pad + N_pad * H_pad) * 2),
    )(xp, w1p)

    # ---- phase 1: S2 = relu(A1 @ S1 + b1) @ W2  (A1 streamed in row tiles) --
    ws1 = ((2 * TM * N_pad * 2) + (N_pad * H_pad * 2) + (H_pad * C_pad * 2)
           + (H_pad * 4) + (2 * TM * C_pad * 2))
    s2 = pl.pallas_call(
        layer1_kernel,
        out_shape=jax.ShapeDtypeStruct((N_pad, C_pad), bf),
        grid_spec=pltpu.PrefetchScalarGridSpec(
            num_scalar_prefetch=0,
            grid=grid,
            in_specs=[
                # A1 row tile stream; deepen to pl.Buffered(3) if DMA exposed.
                pl.BlockSpec((TM, N_pad), lambda i: (i, 0)),
                _resident((N_pad, H_pad)),                     # S1
                _resident((H_pad, C_pad)),                     # W2
                _resident((1, H_pad)),                         # b1
            ],
            out_specs=pl.BlockSpec((TM, C_pad), lambda i: (i, 0)),
        ),
        compiler_params=pltpu.CompilerParams(
            dimension_semantics=("parallel",),
            vmem_limit_bytes=_vmem_limit(ws1)),
        cost_estimate=pl.CostEstimate(
            flops=2 * N_pad * N_pad * H_pad + 2 * N_pad * H_pad * C_pad,
            transcendentals=0,
            bytes_accessed=(N_pad * N_pad + N_pad * H_pad + H_pad * C_pad
                            + N_pad * C_pad) * 2),
    )(A1p, s1, w2p, b1p)

    # ---- phase 2: out = A2 @ S2 + b2  (A2 streamed in row tiles) ------------
    ws2 = ((2 * TM * N_pad * 2) + (N_pad * C_pad * 2) + (C_pad * 4)
           + (2 * TM * C_pad * 4))
    out_p = pl.pallas_call(
        layer2_kernel,
        out_shape=jax.ShapeDtypeStruct((N_pad, C_pad), jnp.float32),
        grid_spec=pltpu.PrefetchScalarGridSpec(
            num_scalar_prefetch=0,
            grid=grid,
            in_specs=[
                # A2 row tile stream; deepen to pl.Buffered(3) if DMA exposed.
                pl.BlockSpec((TM, N_pad), lambda i: (i, 0)),
                _resident((N_pad, C_pad)),                     # S2
                _resident((1, C_pad)),                         # b2
            ],
            out_specs=pl.BlockSpec((TM, C_pad), lambda i: (i, 0)),
        ),
        compiler_params=pltpu.CompilerParams(
            dimension_semantics=("parallel",),
            vmem_limit_bytes=_vmem_limit(ws2)),
        cost_estimate=pl.CostEstimate(
            flops=2 * N_pad * N_pad * C_pad,
            transcendentals=0,
            bytes_accessed=(N_pad * N_pad * 2 + N_pad * C_pad * 2
                            + N_pad * C_pad * 4)),
    )(A2p, s2, b2p)

    return out_p[:N, :nclass]


# ----------------------------------------------------------------------------
# Glue: adjacency construction + parameter init (plain JAX, cheap)
# ----------------------------------------------------------------------------
def build_dense_adj(edge_index, edge_rel, alpha_emb, num_nodes):
    """Replicates: A = sparse_coo(adj[0], alpha(adj[1])) ; A = A + A.T."""
    alp = alpha_emb[edge_rel, 0]                               # (E,)
    A = jnp.zeros((num_nodes, num_nodes), jnp.float32)
    A = A.at[edge_index[0], edge_index[1]].add(alp)            # coalesce = sum
    return A + A.T


def init_gc_params(key, in_f, out_f, num_relations):
    """GraphConvolution.reset_parameters + nn.Embedding default init."""
    kw, kb, ka = jax.random.split(key, 3)
    stdv = 1.0 / math.sqrt(out_f)
    weight = jax.random.uniform(kw, (in_f, out_f), jnp.float32, -stdv, stdv)
    bias = jax.random.uniform(kb, (out_f,), jnp.float32, -stdv, stdv)
    alpha = jax.random.normal(ka, (num_relations + 1, 1), jnp.float32)
    alpha = alpha.at[0].set(0.0)                               # padding_idx=0
    return weight, bias, alpha


def wgcn_reference_bf16(A1, A2, x, w1, b1, w2, b2):
    """Plain-JAX reference with the same bf16/f32-accum casting as the kernels."""
    bf = jnp.bfloat16
    a1, a2 = A1.astype(bf), A2.astype(bf)
    xb, w1b, w2b = x.astype(bf), w1.astype(bf), w2.astype(bf)
    s1 = jnp.dot(xb, w1b, preferred_element_type=jnp.float32).astype(bf)
    h = jnp.maximum(
        jnp.dot(a1, s1, preferred_element_type=jnp.float32) + b1, 0.0)
    s2 = jnp.dot(h.astype(bf), w2b, preferred_element_type=jnp.float32).astype(bf)
    return jnp.dot(a2, s2, preferred_element_type=jnp.float32) + b2


# ----------------------------------------------------------------------------
if __name__ == "__main__":
    # small synthetic problem
    N = 16            # num nodes
    nfeat = 32
    nhid = 32
    nclass = 8
    num_relations = 4
    E = 24            # num edges

    key = jax.random.PRNGKey(0)
    kx, ke, kr, k1, k2 = jax.random.split(key, 5)

    x = jax.random.normal(kx, (N, nfeat), jnp.float32)
    edge_index = jax.random.randint(ke, (2, E), 0, N)               # adj[0]
    edge_rel = jax.random.randint(kr, (E,), 1, num_relations + 1)   # adj[1]

    w1, b1, alpha1 = init_gc_params(k1, nfeat, nhid, num_relations)
    w2, b2, alpha2 = init_gc_params(k2, nhid, nclass, num_relations)

    # gc1 and gc2 each own an alpha embedding -> per-layer adjacency.
    A1 = build_dense_adj(edge_index, edge_rel, alpha1, N)
    A2 = build_dense_adj(edge_index, edge_rel, alpha2, N)

    out = jax.jit(wgcn_forward)(A1, A2, x, w1, b1, w2, b2)
    out = jax.block_until_ready(out)
    assert out.shape == (N, nclass)

    # bf16-matched reference (same casting pattern as the kernels)
    ref_bf16 = wgcn_reference_bf16(A1, A2, x, w1, b1, w2, b2)
    assert jnp.allclose(out, ref_bf16, atol=2e-2, rtol=2e-2), \
        "mismatch vs bf16-matched reference"

    # coarse sanity vs full-f32 reference
    h_f32 = jnp.maximum(A1 @ (x @ w1) + b1, 0.0)
    ref_f32 = A2 @ (h_f32 @ w2) + b2
    assert jnp.allclose(out, ref_f32, atol=2.5e-1, rtol=1e-1), \
        "mismatch vs f32 reference"

    print("KERNEL_OK")
</pallas_src>

<mosaic_0001>
module attributes {stable_mosaic.version = 11 : i64} {
  func.func @xw1_kernel(%arg0: i32, %arg1: memref<128x128xbf16, #tpu.memory_space<vmem>>, %arg2: memref<128x128xbf16, #tpu.memory_space<vmem>>, %arg3: memref<128x128xbf16, #tpu.memory_space<vmem>>) attributes {dimension_semantics = [#tpu.dimension_semantics<parallel>], iteration_bounds = array<i64: 1>, scalar_prefetch = 0 : i64, scratch_operands = 0 : i64, tpu.core_type = #tpu.core_type<tc>, window_params = [{transform_indices = @transform_0, window_bounds = array<i64: 128, 128>}, {pipeline_mode = #tpu.pipeline_mode<synchronous>, transform_indices = @transform_1, window_bounds = array<i64: 128, 128>}, {transform_indices = @transform_2, window_bounds = array<i64: 128, 128>}]} {
    %c0 = arith.constant 0 : index
    %c0_0 = arith.constant 0 : index
    %0 = vector.load %arg1[%c0, %c0_0] : memref<128x128xbf16, #tpu.memory_space<vmem>>, vector<128x128xbf16>
    %c0_1 = arith.constant 0 : index
    %c0_2 = arith.constant 0 : index
    %1 = vector.load %arg2[%c0_1, %c0_2] : memref<128x128xbf16, #tpu.memory_space<vmem>>, vector<128x128xbf16>
    %cst = arith.constant dense<0.000000e+00> : vector<128x128xf32>
    %2 = tpu.matmul %0, %1, %cst {dimension_numbers = #tpu.dot_dimension_numbers<[1], [0], [0], [1], [0, 0, 1, 1], [], []>} : vector<128x128xbf16>, vector<128x128xbf16>, vector<128x128xf32> -> vector<128x128xf32>
    %3 = arith.truncf %2 : vector<128x128xf32> to vector<128x128xbf16>
    %c0_3 = arith.constant 0 : index
    %c0_4 = arith.constant 0 : index
    %4 = vector.load %arg3[%c0_3, %c0_4] : memref<128x128xbf16, #tpu.memory_space<vmem>>, vector<128x128xbf16>
    tpu.vector_store %arg3[%c0_3, %c0_4], %3 {strides = array<i32>} : memref<128x128xbf16, #tpu.memory_space<vmem>>, vector<128x128xbf16>,
    return
  }
  func.func @transform_0(%arg0: i32) -> (i32, i32) {
    %c0_i32 = arith.constant 0 : i32
    %c0_i32_0 = arith.constant 0 : i32
    return %arg0, %c0_i32 : i32, i32
  }
  func.func @transform_1(%arg0: i32) -> (i32, i32) {
    %c0_i32 = arith.constant 0 : i32
    %c0_i32_0 = arith.constant 0 : i32
    %c0_i32_1 = arith.constant 0 : i32
    return %c0_i32, %c0_i32_0 : i32, i32
  }
  func.func @transform_2(%arg0: i32) -> (i32, i32) {
    %c0_i32 = arith.constant 0 : i32
    %c0_i32_0 = arith.constant 0 : i32
    return %arg0, %c0_i32 : i32, i32
  }
}

module attributes {stable_mosaic.version = 11 : i64} {
  func.func @layer1_kernel(%arg0: i32, %arg1: memref<128x128xbf16, #tpu.memory_space<vmem>>, %arg2: memref<128x128xbf16, #tpu.memory_space<vmem>>, %arg3: memref<128x128xbf16, #tpu.memory_space<vmem>>, %arg4: memref<1x128xf32, #tpu.memory_space<vmem>>, %arg5: memref<128x128xbf16, #tpu.memory_space<vmem>>) attributes {dimension_semantics = [#tpu.dimension_semantics<parallel>], iteration_bounds = array<i64: 1>, scalar_prefetch = 0 : i64, scratch_operands = 0 : i64, tpu.core_type = #tpu.core_type<tc>, window_params = [{transform_indices = @transform_0, window_bounds = array<i64: 128, 128>}, {pipeline_mode = #tpu.pipeline_mode<synchronous>, transform_indices = @transform_1, window_bounds = array<i64: 128, 128>}, {pipeline_mode = #tpu.pipeline_mode<synchronous>, transform_indices = @transform_2, window_bounds = array<i64: 128, 128>}, {pipeline_mode = #tpu.pipeline_mode<synchronous>, transform_indices = @transform_3, window_bounds = array<i64: 1, 128>}, {transform_indices = @transform_4, window_bounds = array<i64: 128, 128>}]} {
    %c0 = arith.constant 0 : index
    %c0_0 = arith.constant 0 : index
    %0 = vector.load %arg1[%c0, %c0_0] : memref<128x128xbf16, #tpu.memory_space<vmem>>, vector<128x128xbf16>
    %c0_1 = arith.constant 0 : index
    %c0_2 = arith.constant 0 : index
    %1 = vector.load %arg2[%c0_1, %c0_2] : memref<128x128xbf16, #tpu.memory_space<vmem>>, vector<128x128xbf16>
    %cst = arith.constant dense<0.000000e+00> : vector<128x128xf32>
    %2 = tpu.matmul %0, %1, %cst {dimension_numbers = #tpu.dot_dimension_numbers<[1], [0], [0], [1], [0, 0, 1, 1], [], []>} : vector<128x128xbf16>, vector<128x128xbf16>, vector<128x128xf32> -> vector<128x128xf32>
    %c0_3 = arith.constant 0 : index
    %c0_4 = arith.constant 0 : index
    %3 = vector.load %arg4[%c0_3, %c0_4] : memref<1x128xf32, #tpu.memory_space<vmem>>, vector<1x128xf32>
    %4 = vector.broadcast %3 : vector<1x128xf32> to vector<128x128xf32>
    %5 = arith.addf %2, %4 : vector<128x128xf32>
    %cst_5 = arith.constant 0.000000e+00 : f32
    %6 = vector.broadcast %cst_5 : f32 to vector<128x128xf32>
    %7 = arith.maximumf %5, %6 : vector<128x128xf32>
    %8 = arith.truncf %7 : vector<128x128xf32> to vector<128x128xbf16>
    %c0_6 = arith.constant 0 : index
    %c0_7 = arith.constant 0 : index
    %9 = vector.load %arg3[%c0_6, %c0_7] : memref<128x128xbf16, #tpu.memory_space<vmem>>, vector<128x128xbf16>
    %cst_8 = arith.constant dense<0.000000e+00> : vector<128x128xf32>
    %10 = tpu.matmul %8, %9, %cst_8 {dimension_numbers = #tpu.dot_dimension_numbers<[1], [0], [0], [1], [0, 0, 1, 1], [], []>} : vector<128x128xbf16>, vector<128x128xbf16>, vector<128x128xf32> -> vector<128x128xf32>
    %11 = arith.truncf %10 : vector<128x128xf32> to vector<128x128xbf16>
    %c0_9 = arith.constant 0 : index
    %c0_10 = arith.constant 0 : index
    %12 = vector.load %arg5[%c0_9, %c0_10] : memref<128x128xbf16, #tpu.memory_space<vmem>>, vector<128x128xbf16>
    tpu.vector_store %arg5[%c0_9, %c0_10], %11 {strides = array<i32>} : memref<128x128xbf16, #tpu.memory_space<vmem>>, vector<128x128xbf16>,
    return
  }
  func.func @transform_0(%arg0: i32) -> (i32, i32) {
    %c0_i32 = arith.constant 0 : i32
    %c0_i32_0 = arith.constant 0 : i32
    return %arg0, %c0_i32 : i32, i32
  }
  func.func @transform_1(%arg0: i32) -> (i32, i32) {
    %c0_i32 = arith.constant 0 : i32
    %c0_i32_0 = arith.constant 0 : i32
    %c0_i32_1 = arith.constant 0 : i32
    return %c0_i32, %c0_i32_0 : i32, i32
  }
  func.func @transform_2(%arg0: i32) -> (i32, i32) {
    %c0_i32 = arith.constant 0 : i32
    %c0_i32_0 = arith.constant 0 : i32
    %c0_i32_1 = arith.constant 0 : i32
    return %c0_i32, %c0_i32_0 : i32, i32
  }
  func.func @transform_3(%arg0: i32) -> (i32, i32) {
    %c0_i32 = arith.constant 0 : i32
    %c0_i32_0 = arith.constant 0 : i32
    %c0_i32_1 = arith.constant 0 : i32
    return %c0_i32, %c0_i32_0 : i32, i32
  }
  func.func @transform_4(%arg0: i32) -> (i32, i32) {
    %c0_i32 = arith.constant 0 : i32
    %c0_i32_0 = arith.constant 0 : i32
    return %arg0, %c0_i32 : i32, i32
  }
}

module attributes {stable_mosaic.version = 11 : i64} {
  func.func @layer2_kernel(%arg0: i32, %arg1: memref<128x128xbf16, #tpu.memory_space<vmem>>, %arg2: memref<128x128xbf16, #tpu.memory_space<vmem>>, %arg3: memref<1x128xf32, #tpu.memory_space<vmem>>, %arg4: memref<128x128xf32, #tpu.memory_space<vmem>>) attributes {dimension_semantics = [#tpu.dimension_semantics<parallel>], iteration_bounds = array<i64: 1>, scalar_prefetch = 0 : i64, scratch_operands = 0 : i64, tpu.core_type = #tpu.core_type<tc>, window_params = [{transform_indices = @transform_0, window_bounds = array<i64: 128, 128>}, {pipeline_mode = #tpu.pipeline_mode<synchronous>, transform_indices = @transform_1, window_bounds = array<i64: 128, 128>}, {pipeline_mode = #tpu.pipeline_mode<synchronous>, transform_indices = @transform_2, window_bounds = array<i64: 1, 128>}, {transform_indices = @transform_3, window_bounds = array<i64: 128, 128>}]} {
    %c0 = arith.constant 0 : index
    %c0_0 = arith.constant 0 : index
    %0 = vector.load %arg1[%c0, %c0_0] : memref<128x128xbf16, #tpu.memory_space<vmem>>, vector<128x128xbf16>
    %c0_1 = arith.constant 0 : index
    %c0_2 = arith.constant 0 : index
    %1 = vector.load %arg2[%c0_1, %c0_2] : memref<128x128xbf16, #tpu.memory_space<vmem>>, vector<128x128xbf16>
    %cst = arith.constant dense<0.000000e+00> : vector<128x128xf32>
    %2 = tpu.matmul %0, %1, %cst {dimension_numbers = #tpu.dot_dimension_numbers<[1], [0], [0], [1], [0, 0, 1, 1], [], []>} : vector<128x128xbf16>, vector<128x128xbf16>, vector<128x128xf32> -> vector<128x128xf32>
    %c0_3 = arith.constant 0 : index
    %c0_4 = arith.constant 0 : index
    %3 = vector.load %arg3[%c0_3, %c0_4] : memref<1x128xf32, #tpu.memory_space<vmem>>, vector<1x128xf32>
    %4 = vector.broadcast %3 : vector<1x128xf32> to vector<128x128xf32>
    %5 = arith.addf %2, %4 : vector<128x128xf32>
    %c0_5 = arith.constant 0 : index
    %c0_6 = arith.constant 0 : index
    %6 = vector.load %arg4[%c0_5, %c0_6] : memref<128x128xf32, #tpu.memory_space<vmem>>, vector<128x128xf32>
    tpu.vector_store %arg4[%c0_5, %c0_6], %5 {strides = array<i32>} : memref<128x128xf32, #tpu.memory_space<vmem>>, vector<128x128xf32>,
    return
  }
  func.func @transform_0(%arg0: i32) -> (i32, i32) {
    %c0_i32 = arith.constant 0 : i32
    %c0_i32_0 = arith.constant 0 : i32
    return %arg0, %c0_i32 : i32, i32
  }
  func.func @transform_1(%arg0: i32) -> (i32, i32) {
    %c0_i32 = arith.constant 0 : i32
    %c0_i32_0 = arith.constant 0 : i32
    %c0_i32_1 = arith.constant 0 : i32
    return %c0_i32, %c0_i32_0 : i32, i32
  }
  func.func @transform_2(%arg0: i32) -> (i32, i32) {
    %c0_i32 = arith.constant 0 : i32
    %c0_i32_0 = arith.constant 0 : i32
    %c0_i32_1 = arith.constant 0 : i32
    return %c0_i32, %c0_i32_0 : i32, i32
  }
  func.func @transform_3(%arg0: i32) -> (i32, i32) {
    %c0_i32 = arith.constant 0 : i32
    %c0_i32_0 = arith.constant 0 : i32
    return %arg0, %c0_i32 : i32, i32
  }
}

</mosaic_0001>

<bundles_post_ra>
// kernel: wgcn_forward.3
= control target key start
LH: loop header
LB: loop body
LE: loop exit
PB: predicated region body
PF: predicated region fallthrough
CT: control target
= control target key end

     0   :  { %s583_s1 = inlined_call_operand.vmem [shape: bf16[128,128], index: 1, kind: input, shape index: {}]   ;;  %s584_s0 = inlined_call_operand.vmem [shape: bf16[128,128], index: 0, kind: input, shape index: {}]   ;;  %s585_s2 = inlined_call_operand.vmem [shape: bf16[128,128], index: 2, kind: output, shape index: {}]  }
   0x1   :  { %v480_v0 = vld [vmem:[%s583_s1] sm:$0xff]   ;;  %v481_v1 = vld [vmem:[%s583_s1 + $0x8] sm:$0xff]   ;;  %v482_v2 = vld [vmem:[%s583_s1 + $0x10] sm:$0xff]  }
   0x2   :  { %432 = vmatprep.subr.bf16.mxu0 %v480_v0  ;;  %464 = vmatprep.subr.bf16.mxu1 %v480_v0  ;;  %v483_v3 = vld [vmem:[%s583_s1 + $0x18] sm:$0xff]   ;;  %v488_v4 = vld [vmem:[%s584_s0] sm:$0xff]   ;;  %v485_v7 = vld [vmem:[%s583_s1 + $0x28] sm:$0xff]  }
   0x3   :  { %433 = vmatpush3.bf16.msra.mxu0 %v480_v0  ;;  %472 = vmatpush3.bf16.msra.mxu1 %v480_v0  ;;  %v489_v5 = vld [vmem:[%s584_s0 + $0x20] sm:$0xff]   ;;  %v486_v8 = vld [vmem:[%s583_s1 + $0x30] sm:$0xff]   ;;  %v487_v9 = vld [vmem:[%s583_s1 + $0x38] sm:$0xff]  }
   0x4   :  { %434 = vmatprep.subr.bf16.mxu0 %v481_v1  ;;  %465 = vmatprep.subr.bf16.mxu1 %v481_v1  ;;  %v484_v6 = vld [vmem:[%s583_s1 + $0x20] sm:$0xff]   ;;  %v490_v10 = vld [vmem:[%s584_s0 + $0x8] sm:$0xff]   ;;  %v492_v12 = vld [vmem:[%s584_s0 + $0x10] sm:$0xff]  }
   0x5   :  { %448 = vmatprep.mubr.bf16.mxu0 %v488_v4  ;;  %456 = vmatprep.mubr.bf16.mxu1 %v489_v5  ;;  %v491_v11 = vld [vmem:[%s584_s0 + $0x28] sm:$0xff]   ;;  %v493_v13 = vld [vmem:[%s584_s0 + $0x30] sm:$0xff]   ;;  %v494_v14 = vld [vmem:[%s584_s0 + $0x18] sm:$0xff]  }
   0x6   :  { %v495_v15 = vld [vmem:[%s584_s0 + $0x38] sm:$0xff]  }
   0x7   :  { %435 = vmatpush3.bf16.msra.mxu0 %v481_v1  ;;  %473 = vmatpush3.bf16.msra.mxu1 %v481_v1 }
   0x8   :  { %436 = vmatprep.subr.bf16.mxu0 %v482_v2  ;;  %466 = vmatprep.subr.bf16.mxu1 %v482_v2 }
   0xb   :  { %437 = vmatpush3.bf16.msra.mxu0 %v482_v2  ;;  %474 = vmatpush3.bf16.msra.mxu1 %v482_v2 }
   0xc   :  { %438 = vmatprep.subr.bf16.mxu0 %v483_v3  ;;  %467 = vmatprep.subr.bf16.mxu1 %v483_v3 }
   0xf   :  { %439 = vmatpush3.bf16.msra.mxu0 %v483_v3  ;;  %475 = vmatpush3.bf16.msra.mxu1 %v483_v3 }
  0x10   :  { %440 = vmatprep.subr.bf16.mxu0 %v484_v6  ;;  %468 = vmatprep.subr.bf16.mxu1 %v484_v6 }
  0x13   :  { %441 = vmatpush3.bf16.msra.mxu0 %v484_v6  ;;  %476 = vmatpush3.bf16.msra.mxu1 %v484_v6 }
  0x14   :  { %442 = vmatprep.subr.bf16.mxu0 %v485_v7  ;;  %469 = vmatprep.subr.bf16.mxu1 %v485_v7 }
  0x17   :  { %443 = vmatpush3.bf16.msra.mxu0 %v485_v7  ;;  %477 = vmatpush3.bf16.msra.mxu1 %v485_v7 }
  0x18   :  { %444 = vmatprep.subr.bf16.mxu0 %v486_v8  ;;  %470 = vmatprep.subr.bf16.mxu1 %v486_v8 }
  0x1b   :  { %445 = vmatpush3.bf16.msra.mxu0 %v486_v8  ;;  %478 = vmatpush3.bf16.msra.mxu1 %v486_v8 }
  0x1c   :  { %446 = vmatprep.subr.bf16.mxu0 %v487_v9  ;;  %471 = vmatprep.subr.bf16.mxu1 %v487_v9 }
  0x1f   :  { %447 = vmatpush3.bf16.msra.mxu0 %v487_v9  ;;  %479 = vmatpush3.bf16.msra.mxu1 %v487_v9 }
  0x22   :  { %449 = vmatmul.mubr.bf16.vlgmr.msra.gmra.mrb[0].mxu0 %v490_v10  ;;  %457 = vmatmul.mubr.bf16.vlgmr.msra.gmra.mrb[0].mxu1 %v491_v11 }
  0x23   :  { %452 = vmatprep.mubr.bf16.mxu0 %v492_v12  ;;  %460 = vmatprep.mubr.bf16.mxu1 %v493_v13 }
  0x2a   :  { %453 = vmatmul.mubr.bf16.gmra.mrb[4].mxu0 %v494_v14  ;;  %461 = vmatmul.mubr.bf16.gmra.mrb[4].mxu1 %v495_v15 }
  0xf5   :  { %v450_v16 = vpop.f32.mrb[0].mxu0  ;;  %v458_v17 = vpop.f32.mrb[0].mxu1 }
  0xf6   :  { %v174_v18 = vpop.f32.mrb[1].mxu0  ;;  %v206_v19 = vpop.f32.mrb[1].mxu1 }
  0xf7   :  { %v451_v20 = vpop.f32.mrb[2].mxu0  ;;  %v459_v21 = vpop.f32.mrb[2].mxu1 }
  0xf8   :  { %v377_v22 = vpack.c.bf16 %v451_v20, %v450_v16  ;;  %v397_v23 = vpack.c.bf16 %v459_v21, %v458_v17  ;;  %v177_v24 = vpop.f32.mrb[3].mxu0  ;;  %v209_v25 = vpop.f32.mrb[3].mxu1 }
  0xf9   :  { %v372_v26 = vpack.c.bf16 %v177_v24, %v174_v18  ;;  %v392_v27 = vpack.c.bf16 %v209_v25, %v206_v19 }
  0xfa   :  { %409 = vst [vmem:[%s585_s2 + $0x8] sm:$0xff] %v377_v22   ;;  %413 = vst [vmem:[%s585_s2 + $0x28] sm:$0xff] %v397_v23  }
  0xfb   :  { %373 = vst [vmem:[%s585_s2] sm:$0xff] %v372_v26   ;;  %412 = vst [vmem:[%s585_s2 + $0x20] sm:$0xff] %v392_v27  }
  0xfd   :  { %v454_v28 = vpop.f32.mrb[4].mxu0  ;;  %v462_v29 = vpop.f32.mrb[4].mxu1 }
  0xfe   :  { %v190_v30 = vpop.f32.mrb[5].mxu0  ;;  %v222_v31 = vpop.f32.mrb[5].mxu1 }
  0xff   :  { %v455_v32 = vpop.f32.mrb[6].mxu0  ;;  %v463_v33 = vpop.f32.mrb[6].mxu1 }
 0x100   :  { %v387_v34 = vpack.c.bf16 %v455_v32, %v454_v28  ;;  %v407_v35 = vpack.c.bf16 %v463_v33, %v462_v29  ;;  %v193_v36 = vpop.f32.mrb[7].mxu0  ;;  %v225_v37 = vpop.f32.mrb[7].mxu1 }
 0x101   :  { %v382_v38 = vpack.c.bf16 %v193_v36, %v190_v30  ;;  %v402_v39 = vpack.c.bf16 %v225_v37, %v222_v31 }
 0x102   :  { %411 = vst [vmem:[%s585_s2 + $0x18] sm:$0xff] %v387_v34   ;;  %415 = vst [vmem:[%s585_s2 + $0x38] sm:$0xff] %v407_v35  }
 0x103   :  { %410 = vst [vmem:[%s585_s2 + $0x10] sm:$0xff] %v382_v38   ;;  %414 = vst [vmem:[%s585_s2 + $0x30] sm:$0xff] %v402_v39  }

// kernel: wgcn_forward.5
= control target key start
LH: loop header
LB: loop body
LE: loop exit
PB: predicated region body
PF: predicated region fallthrough
CT: control target
= control target key end

     0   :  { %s483_s1 = inlined_call_operand.vmem [shape: bf16[128,128], index: 1, kind: input, shape index: {}]   ;;  %s484_s0 = inlined_call_operand.vmem [shape: bf16[128,128], index: 0, kind: input, shape index: {}]   ;;  %s485_s2 = inlined_call_operand.vmem [shape: f32[1,128], index: 2, kind: input, shape index: {}]   ;;  %s486_s3 = inlined_call_operand.vmem [shape: f32[128,128], index: 3, kind: output, shape index: {}]  }
   0x1   :  { %v348_v0 = vld [vmem:[%s483_s1] sm:$0xff]   ;;  %v349_v1 = vld [vmem:[%s483_s1 + $0x8] sm:$0xff]   ;;  %v350_v2 = vld [vmem:[%s483_s1 + $0x10] sm:$0xff]  }
   0x2   :  { %300 = vmatprep.subr.bf16.mxu0 %v348_v0  ;;  %332 = vmatprep.subr.bf16.mxu1 %v348_v0  ;;  %v351_v3 = vld [vmem:[%s483_s1 + $0x18] sm:$0xff]   ;;  %v356_v4 = vld [vmem:[%s484_s0] sm:$0xff]   ;;  %v353_v7 = vld [vmem:[%s483_s1 + $0x28] sm:$0xff]  }
   0x3   :  { %301 = vmatpush3.bf16.msra.mxu0 %v348_v0  ;;  %340 = vmatpush3.bf16.msra.mxu1 %v348_v0  ;;  %v357_v5 = vld [vmem:[%s484_s0 + $0x20] sm:$0xff]   ;;  %v354_v8 = vld [vmem:[%s483_s1 + $0x30] sm:$0xff]   ;;  %v355_v9 = vld [vmem:[%s483_s1 + $0x38] sm:$0xff]  }
   0x4   :  { %302 = vmatprep.subr.bf16.mxu0 %v349_v1  ;;  %333 = vmatprep.subr.bf16.mxu1 %v349_v1  ;;  %v352_v6 = vld [vmem:[%s483_s1 + $0x20] sm:$0xff]   ;;  %v358_v10 = vld [vmem:[%s484_s0 + $0x8] sm:$0xff]   ;;  %v360_v12 = vld [vmem:[%s484_s0 + $0x10] sm:$0xff]  }
   0x5   :  { %316 = vmatprep.mubr.bf16.mxu0 %v356_v4  ;;  %324 = vmatprep.mubr.bf16.mxu1 %v357_v5  ;;  %v359_v11 = vld [vmem:[%s484_s0 + $0x28] sm:$0xff]   ;;  %v361_v13 = vld [vmem:[%s484_s0 + $0x30] sm:$0xff]   ;;  %v362_v14 = vld [vmem:[%s484_s0 + $0x18] sm:$0xff]  }
   0x6   :  { %v363_v15 = vld [vmem:[%s484_s0 + $0x38] sm:$0xff]   ;;  %v267_v16 = vld [vmem:[%s485_s2] ss:$0 sm:$0xff] }
   0x7   :  { %303 = vmatpush3.bf16.msra.mxu0 %v349_v1  ;;  %341 = vmatpush3.bf16.msra.mxu1 %v349_v1 }
   0x8   :  { %304 = vmatprep.subr.bf16.mxu0 %v350_v2  ;;  %334 = vmatprep.subr.bf16.mxu1 %v350_v2 }
   0xb   :  { %305 = vmatpush3.bf16.msra.mxu0 %v350_v2  ;;  %342 = vmatpush3.bf16.msra.mxu1 %v350_v2 }
   0xc   :  { %306 = vmatprep.subr.bf16.mxu0 %v351_v3  ;;  %335 = vmatprep.subr.bf16.mxu1 %v351_v3 }
   0xf   :  { %307 = vmatpush3.bf16.msra.mxu0 %v351_v3  ;;  %343 = vmatpush3.bf16.msra.mxu1 %v351_v3 }
  0x10   :  { %308 = vmatprep.subr.bf16.mxu0 %v352_v6  ;;  %336 = vmatprep.subr.bf16.mxu1 %v352_v6 }
  0x13   :  { %309 = vmatpush3.bf16.msra.mxu0 %v352_v6  ;;  %344 = vmatpush3.bf16.msra.mxu1 %v352_v6 }
  0x14   :  { %310 = vmatprep.subr.bf16.mxu0 %v353_v7  ;;  %337 = vmatprep.subr.bf16.mxu1 %v353_v7 }
  0x17   :  { %311 = vmatpush3.bf16.msra.mxu0 %v353_v7  ;;  %345 = vmatpush3.bf16.msra.mxu1 %v353_v7 }
  0x18   :  { %312 = vmatprep.subr.bf16.mxu0 %v354_v8  ;;  %338 = vmatprep.subr.bf16.mxu1 %v354_v8 }
  0x1b   :  { %313 = vmatpush3.bf16.msra.mxu0 %v354_v8  ;;  %346 = vmatpush3.bf16.msra.mxu1 %v354_v8 }
  0x1c   :  { %314 = vmatprep.subr.bf16.mxu0 %v355_v9  ;;  %339 = vmatprep.subr.bf16.mxu1 %v355_v9 }
  0x1f   :  { %315 = vmatpush3.bf16.msra.mxu0 %v355_v9  ;;  %347 = vmatpush3.bf16.msra.mxu1 %v355_v9 }
  0x22   :  { %317 = vmatmul.mubr.bf16.vlgmr.msra.gmra.mrb[0].mxu0 %v358_v10  ;;  %325 = vmatmul.mubr.bf16.vlgmr.msra.gmra.mrb[0].mxu1 %v359_v11 }
  0x23   :  { %320 = vmatprep.mubr.bf16.mxu0 %v360_v12  ;;  %328 = vmatprep.mubr.bf16.mxu1 %v361_v13 }
  0x2a   :  { %321 = vmatmul.mubr.bf16.gmra.mrb[4].mxu0 %v362_v14  ;;  %329 = vmatmul.mubr.bf16.gmra.mrb[4].mxu1 %v363_v15 }
  0xf5   :  { %v318_v17 = vpop.f32.mrb[0].mxu0  ;;  %v326_v18 = vpop.f32.mrb[0].mxu1 }
  0xf6   :  { %v193_v19 = vadd.f32 %v318_v17, %v267_v16  ;;  %v225_v20 = vadd.f32 %v326_v18, %v267_v16  ;;  %v184_v21 = vpop.f32.mrb[1].mxu0  ;;  %v216_v22 = vpop.f32.mrb[1].mxu1 }
  0xf7   :  { %v185_v23 = vadd.f32 %v267_v16, %v184_v21  ;;  %v217_v24 = vadd.f32 %v267_v16, %v216_v22  ;;  %v319_v25 = vpop.f32.mrb[2].mxu0  ;;  %v327_v26 = vpop.f32.mrb[2].mxu1 }
  0xf8   :  { %249 = vst [vmem:[%s486_s3 + $0x10] sm:$0xff] %v193_v19  ;;  %257 = vst [vmem:[%s486_s3 + $0x50] sm:$0xff] %v225_v20  ;;  %v196_v27 = vadd.f32 %v319_v25, %v267_v16  ;;  %v228_v28 = vadd.f32 %v327_v26, %v267_v16  ;;  %v187_v29 = vpop.f32.mrb[3].mxu0  ;;  %v219_v30 = vpop.f32.mrb[3].mxu1 }
  0xf9   :  { %247 = vst [vmem:[%s486_s3] sm:$0xff] %v185_v23  ;;  %255 = vst [vmem:[%s486_s3 + $0x40] sm:$0xff] %v217_v24  ;;  %v188_v31 = vadd.f32 %v267_v16, %v187_v29  ;;  %v220_v32 = vadd.f32 %v267_v16, %v219_v30 }
  0xfa   :  { %250 = vst [vmem:[%s486_s3 + $0x18] sm:$0xff] %v196_v27  ;;  %258 = vst [vmem:[%s486_s3 + $0x58] sm:$0xff] %v228_v28 }
  0xfb   :  { %248 = vst [vmem:[%s486_s3 + $0x8] sm:$0xff] %v188_v31  ;;  %256 = vst [vmem:[%s486_s3 + $0x48] sm:$0xff] %v220_v32 }
  0xfd   :  { %v322_v33 = vpop.f32.mrb[4].mxu0  ;;  %v330_v34 = vpop.f32.mrb[4].mxu1 }
  0xfe   :  { %v209_v35 = vadd.f32 %v322_v33, %v267_v16  ;;  %v241_v36 = vadd.f32 %v330_v34, %v267_v16  ;;  %v200_v37 = vpop.f32.mrb[5].mxu0  ;;  %v232_v38 = vpop.f32.mrb[5].mxu1 }
  0xff   :  { %v201_v39 = vadd.f32 %v267_v16, %v200_v37  ;;  %v233_v40 = vadd.f32 %v267_v16, %v232_v38  ;;  %v323_v41 = vpop.f32.mrb[6].mxu0  ;;  %v331_v42 = vpop.f32.mrb[6].mxu1 }
 0x100   :  { %253 = vst [vmem:[%s486_s3 + $0x30] sm:$0xff] %v209_v35  ;;  %261 = vst [vmem:[%s486_s3 + $0x70] sm:$0xff] %v241_v36  ;;  %v212_v43 = vadd.f32 %v323_v41, %v267_v16  ;;  %v244_v44 = vadd.f32 %v331_v42, %v267_v16  ;;  %v203_v45 = vpop.f32.mrb[7].mxu0  ;;  %v235_v46 = vpop.f32.mrb[7].mxu1 }
 0x101   :  { %251 = vst [vmem:[%s486_s3 + $0x20] sm:$0xff] %v201_v39  ;;  %259 = vst [vmem:[%s486_s3 + $0x60] sm:$0xff] %v233_v40  ;;  %v204_v47 = vadd.f32 %v267_v16, %v203_v45  ;;  %v236_v48 = vadd.f32 %v267_v16, %v235_v46 }
 0x102   :  { %254 = vst [vmem:[%s486_s3 + $0x38] sm:$0xff] %v212_v43  ;;  %262 = vst [vmem:[%s486_s3 + $0x78] sm:$0xff] %v244_v44 }
 0x103   :  { %252 = vst [vmem:[%s486_s3 + $0x28] sm:$0xff] %v204_v47  ;;  %260 = vst [vmem:[%s486_s3 + $0x68] sm:$0xff] %v236_v48 }

// kernel: wgcn_forward.4
= control target key start
LH: loop header
LB: loop body
LE: loop exit
PB: predicated region body
PF: predicated region fallthrough
CT: control target
= control target key end

     0   :  { %s867_s1 = inlined_call_operand.vmem [shape: bf16[128,128], index: 1, kind: input, shape index: {}]   ;;  %s868_s0 = inlined_call_operand.vmem [shape: bf16[128,128], index: 0, kind: input, shape index: {}]   ;;  %s869_s2 = inlined_call_operand.vmem [shape: bf16[128,128], index: 2, kind: input, shape index: {}]   ;;  %s870_s3 = inlined_call_operand.vmem [shape: f32[1,128], index: 3, kind: input, shape index: {}]   ;;  %s871_s4 = inlined_call_operand.vmem [shape: bf16[128,128], index: 4, kind: output, shape index: {}]  }
   0x1   :  { %v719_v0 = vld [vmem:[%s867_s1] sm:$0xff]   ;;  %v720_v1 = vld [vmem:[%s867_s1 + $0x8] sm:$0xff]   ;;  %v721_v2 = vld [vmem:[%s867_s1 + $0x10] sm:$0xff]  }
   0x2   :  { %655 = vmatprep.subr.bf16.mxu0 %v719_v0  ;;  %v722_v3 = vld [vmem:[%s867_s1 + $0x18] sm:$0xff]   ;;  %v727_v4 = vld [vmem:[%s868_s0] sm:$0xff]   ;;  %v724_v6 = vld [vmem:[%s867_s1 + $0x28] sm:$0xff]  }
   0x3   :  { %656 = vmatpush3.bf16.msra.mxu0 %v719_v0  ;;  %671 = vmatprep.mubr.bf16.mxu0 %v727_v4  ;;  %v723_v5 = vld [vmem:[%s867_s1 + $0x20] sm:$0xff]   ;;  %v736_v8 = vld [vmem:[%s869_s2 + $0x8] sm:$0xff]   ;;  %v725_v9 = vld [vmem:[%s867_s1 + $0x30] sm:$0xff]  }
   0x4   :  { %657 = vmatprep.subr.bf16.mxu0 %v720_v1  ;;  %v735_v7 = vld [vmem:[%s869_s2] sm:$0xff]   ;;  %v737_v10 = vld [vmem:[%s869_s2 + $0x10] sm:$0xff]   ;;  %v726_v11 = vld [vmem:[%s867_s1 + $0x38] sm:$0xff]  }
   0x5   :  { %687 = vmatprep.subr.bf16.mxu1 %v735_v7  ;;  %v738_v12 = vld [vmem:[%s869_s2 + $0x18] sm:$0xff]   ;;  %v739_v13 = vld [vmem:[%s869_s2 + $0x20] sm:$0xff]   ;;  %v728_v14 = vld [vmem:[%s868_s0 + $0x8] sm:$0xff]  }
   0x6   :  { %688 = vmatpush3.bf16.msra.mxu1 %v735_v7  ;;  %v729_v15 = vld [vmem:[%s868_s0 + $0x10] sm:$0xff]   ;;  %v740_v16 = vld [vmem:[%s869_s2 + $0x28] sm:$0xff]   ;;  %v730_v17 = vld [vmem:[%s868_s0 + $0x18] sm:$0xff]  }
   0x7   :  { %658 = vmatpush3.bf16.msra.mxu0 %v720_v1  ;;  %689 = vmatprep.subr.bf16.mxu1 %v736_v8  ;;  %v731_v18 = vld [vmem:[%s868_s0 + $0x20] sm:$0xff]   ;;  %v732_v19 = vld [vmem:[%s868_s0 + $0x28] sm:$0xff]   ;;  %v733_v20 = vld [vmem:[%s868_s0 + $0x30] sm:$0xff]  }
   0x8   :  { %659 = vmatprep.subr.bf16.mxu0 %v721_v2  ;;  %v734_v21 = vld [vmem:[%s868_s0 + $0x38] sm:$0xff]   ;;  %v741_v22 = vld [vmem:[%s869_s2 + $0x30] sm:$0xff]   ;;  %v519_v24 = vld [vmem:[%s870_s3] ss:$0 sm:$0xff] }
   0x9   :  { %v742_v23 = vld [vmem:[%s869_s2 + $0x38] sm:$0xff]  }
   0xa   :  { %690 = vmatpush3.bf16.msra.mxu1 %v736_v8 }
   0xb   :  { %660 = vmatpush3.bf16.msra.mxu0 %v721_v2  ;;  %691 = vmatprep.subr.bf16.mxu1 %v737_v10 }
   0xc   :  { %661 = vmatprep.subr.bf16.mxu0 %v722_v3 }
   0xe   :  { %692 = vmatpush3.bf16.msra.mxu1 %v737_v10 }
   0xf   :  { %662 = vmatpush3.bf16.msra.mxu0 %v722_v3  ;;  %693 = vmatprep.subr.bf16.mxu1 %v738_v12 }
  0x10   :  { %663 = vmatprep.subr.bf16.mxu0 %v723_v5 }
  0x12   :  { %694 = vmatpush3.bf16.msra.mxu1 %v738_v12 }
  0x13   :  { %664 = vmatpush3.bf16.msra.mxu0 %v723_v5  ;;  %695 = vmatprep.subr.bf16.mxu1 %v739_v13 }
  0x14   :  { %665 = vmatprep.subr.bf16.mxu0 %v724_v6 }
  0x16   :  { %696 = vmatpush3.bf16.msra.mxu1 %v739_v13 }
  0x17   :  { %666 = vmatpush3.bf16.msra.mxu0 %v724_v6  ;;  %697 = vmatprep.subr.bf16.mxu1 %v740_v16 }
  0x18   :  { %667 = vmatprep.subr.bf16.mxu0 %v725_v9 }
  0x1a   :  { %698 = vmatpush3.bf16.msra.mxu1 %v740_v16 }
  0x1b   :  { %668 = vmatpush3.bf16.msra.mxu0 %v725_v9  ;;  %699 = vmatprep.subr.bf16.mxu1 %v741_v22 }
  0x1c   :  { %669 = vmatprep.subr.bf16.mxu0 %v726_v11 }
  0x1e   :  { %700 = vmatpush3.bf16.msra.mxu1 %v741_v22 }
  0x1f   :  { %670 = vmatpush3.bf16.msra.mxu0 %v726_v11  ;;  %701 = vmatprep.subr.bf16.mxu1 %v742_v23 }
  0x22   :  { %672 = vmatmul.mubr.bf16.vlgmr.msra.gmra.mrb[0].mxu0 %v728_v14  ;;  %702 = vmatpush3.bf16.msra.mxu1 %v742_v23 }
  0x23   :  { %675 = vmatprep.mubr.bf16.mxu0 %v729_v15 }
  0x2a   :  { %676 = vmatmul.mubr.bf16.gmra.mrb[4].mxu0 %v730_v17 }
  0x2b   :  { %679 = vmatprep.mubr.bf16.mxu0 %v731_v18 }
  0x32   :  { %680 = vmatmul.mubr.bf16.gmra.mrb[8].mxu0 %v732_v19 }
  0x33   :  { %683 = vmatprep.mubr.bf16.mxu0 %v733_v20 }
  0x3a   :  { %684 = vmatmul.mubr.bf16.gmra.mrb[12].mxu0 %v734_v21 }
  0xf5   :  { %v673_v25 = vpop.f32.mrb[0].mxu0 }
  0xf6   :  { %v196_v26 = vadd.f32 %v673_v25, %v519_v24  ;;  %v187_v27 = vpop.f32.mrb[1].mxu0 }
  0xf7   :  { %v188_v28 = vadd.f32 %v519_v24, %v187_v27  ;;  %v674_v29 = vpop.f32.mrb[2].mxu0 }
  0xf8   :  { %v199_v30 = vadd.f32 %v674_v29, %v519_v24  ;;  %v190_v31 = vpop.f32.mrb[3].mxu0  ;;  %v252_v33 = vmax.f32 %v196_v26, 0.0 }
  0xf9   :  { %v191_v32 = vadd.f32 %v519_v24, %v190_v31  ;;  %v250_v35 = vmax.f32 %v188_v28, 0.0 }
  0xfa   :  { %v253_v34 = vmax.f32 %v199_v30, 0.0 }
  0xfb   :  { %v251_v36 = vmax.f32 %v191_v32, 0.0 }
  0xfc   :  { %v267_v37 = vpack.c.bf16 %v253_v34, %v252_v33 }
  0xfd   :  { %v677_v38 = vpop.f32.mrb[4].mxu0  ;;  %v266_v39 = vpack.c.bf16 %v251_v36, %v250_v35 }
  0xfe   :  { %v212_v40 = vadd.f32 %v677_v38, %v519_v24  ;;  %v203_v41 = vpop.f32.mrb[5].mxu0 }
  0xff   :  { %v204_v42 = vadd.f32 %v519_v24, %v203_v41  ;;  %v678_v43 = vpop.f32.mrb[6].mxu0  ;;  %703 = vmatprep.mubr.bf16.mxu1 %v266_v39 }
 0x100   :  { %v215_v44 = vadd.f32 %v678_v43, %v519_v24  ;;  %v206_v45 = vpop.f32.mrb[7].mxu0  ;;  %704 = vmatmul.mubr.bf16.vlgmr.msra.gmra.mrb[0].mxu1 %v267_v37  ;;  %v256_v47 = vmax.f32 %v212_v40, 0.0 }
 0x101   :  { %v207_v46 = vadd.f32 %v519_v24, %v206_v45  ;;  %v254_v49 = vmax.f32 %v204_v42, 0.0 }
 0x102   :  { %v257_v48 = vmax.f32 %v215_v44, 0.0 }
 0x103   :  { %v255_v50 = vmax.f32 %v207_v46, 0.0 }
 0x104   :  { %v269_v51 = vpack.c.bf16 %v257_v48, %v256_v47 }
 0x105   :  { %v268_v52 = vpack.c.bf16 %v255_v50, %v254_v49  ;;  %v681_v53 = vpop.f32.mrb[8].mxu0 }
 0x106   :  { %v228_v54 = vadd.f32 %v681_v53, %v519_v24  ;;  %v219_v55 = vpop.f32.mrb[9].mxu0 }
 0x107   :  { %v220_v56 = vadd.f32 %v519_v24, %v219_v55  ;;  %v682_v57 = vpop.f32.mrb[10].mxu0  ;;  %707 = vmatprep.mubr.bf16.mxu1 %v268_v52 }
 0x108   :  { %v231_v58 = vadd.f32 %v682_v57, %v519_v24  ;;  %v222_v59 = vpop.f32.mrb[11].mxu0  ;;  %708 = vmatmul.mubr.bf16.gmra.mrb[4].mxu1 %v269_v51  ;;  %v260_v61 = vmax.f32 %v228_v54, 0.0 }
 0x109   :  { %v223_v60 = vadd.f32 %v519_v24, %v222_v59  ;;  %v258_v63 = vmax.f32 %v220_v56, 0.0 }
 0x10a   :  { %v261_v62 = vmax.f32 %v231_v58, 0.0 }
 0x10b   :  { %v259_v0 = vmax.f32 %v223_v60, 0.0 }
 0x10c   :  { %v271_v1 = vpack.c.bf16 %v261_v62, %v260_v61 }
 0x10d   :  { %v270_v2 = vpack.c.bf16 %v259_v0, %v258_v63  ;;  %v685_v3 = vpop.f32.mrb[12].mxu0 }
 0x10e   :  { %v244_v4 = vadd.f32 %v685_v3, %v519_v24  ;;  %v235_v5 = vpop.f32.mrb[13].mxu0 }
 0x10f   :  { %v236_v6 = vadd.f32 %v519_v24, %v235_v5  ;;  %v686_v7 = vpop.f32.mrb[14].mxu0  ;;  %711 = vmatprep.mubr.bf16.mxu1 %v270_v2 }
 0x110   :  { %v247_v8 = vadd.f32 %v686_v7, %v519_v24  ;;  %v238_v9 = vpop.f32.mrb[15].mxu0  ;;  %712 = vmatmul.mubr.bf16.gmra.mrb[8].mxu1 %v271_v1  ;;  %v264_v11 = vmax.f32 %v244_v4, 0.0 }
 0x111   :  { %v239_v10 = vadd.f32 %v519_v24, %v238_v9  ;;  %v262_v13 = vmax.f32 %v236_v6, 0.0 }
 0x112   :  { %v265_v12 = vmax.f32 %v247_v8, 0.0 }
 0x113   :  { %v263_v14 = vmax.f32 %v239_v10, 0.0 }
 0x114   :  { %v273_v15 = vpack.c.bf16 %v265_v12, %v264_v11 }
 0x115   :  { %v272_v16 = vpack.c.bf16 %v263_v14, %v262_v13 }
 0x117   :  { %715 = vmatprep.mubr.bf16.mxu1 %v272_v16 }
 0x118   :  { %716 = vmatmul.mubr.bf16.gmra.mrb[12].mxu1 %v273_v15 }
 0x1d3   :  { %v705_v17 = vpop.f32.mrb[0].mxu1 }
 0x1d4   :  { %v372_v18 = vpop.f32.mrb[1].mxu1 }
 0x1d5   :  { %v706_v19 = vpop.f32.mrb[2].mxu1 }
 0x1d6   :  { %v584_v20 = vpack.c.bf16 %v706_v19, %v705_v17  ;;  %v375_v21 = vpop.f32.mrb[3].mxu1 }
 0x1d7   :  { %v579_v22 = vpack.c.bf16 %v375_v21, %v372_v18 }
 0x1d8   :  { %616 = vst [vmem:[%s871_s4 + $0x8] sm:$0xff] %v584_v20  }
 0x1d9   :  { %580 = vst [vmem:[%s871_s4] sm:$0xff] %v579_v22  }
 0x1db   :  { %v709_v23 = vpop.f32.mrb[4].mxu1 }
 0x1dc   :  { %v388_v24 = vpop.f32.mrb[5].mxu1 }
 0x1dd   :  { %v710_v25 = vpop.f32.mrb[6].mxu1 }
 0x1de   :  { %v594_v26 = vpack.c.bf16 %v710_v25, %v709_v23  ;;  %v391_v27 = vpop.f32.mrb[7].mxu1 }
 0x1df   :  { %v589_v28 = vpack.c.bf16 %v391_v27, %v388_v24 }
 0x1e0   :  { %618 = vst [vmem:[%s871_s4 + $0x18] sm:$0xff] %v594_v26  }
 0x1e1   :  { %617 = vst [vmem:[%s871_s4 + $0x10] sm:$0xff] %v589_v28  }
 0x1e3   :  { %v713_v29 = vpop.f32.mrb[8].mxu1 }
 0x1e4   :  { %v404_v30 = vpop.f32.mrb[9].mxu1 }
 0x1e5   :  { %v714_v31 = vpop.f32.mrb[10].mxu1 }
 0x1e6   :  { %v604_v32 = vpack.c.bf16 %v714_v31, %v713_v29  ;;  %v407_v33 = vpop.f32.mrb[11].mxu1 }
 0x1e7   :  { %v599_v34 = vpack.c.bf16 %v407_v33, %v404_v30 }
 0x1e8   :  { %620 = vst [vmem:[%s871_s4 + $0x28] sm:$0xff] %v604_v32  }
 0x1e9   :  { %619 = vst [vmem:[%s871_s4 + $0x20] sm:$0xff] %v599_v34  }
 0x1eb   :  { %v717_v35 = vpop.f32.mrb[12].mxu1 }
 0x1ec   :  { %v420_v36 = vpop.f32.mrb[13].mxu1 }
 0x1ed   :  { %v718_v37 = vpop.f32.mrb[14].mxu1 }
 0x1ee   :  { %v614_v38 = vpack.c.bf16 %v718_v37, %v717_v35  ;;  %v423_v39 = vpop.f32.mrb[15].mxu1 }
 0x1ef   :  { %v609_v40 = vpack.c.bf16 %v423_v39, %v420_v36 }
 0x1f0   :  { %622 = vst [vmem:[%s871_s4 + $0x38] sm:$0xff] %v614_v38  }
 0x1f1   :  { %621 = vst [vmem:[%s871_s4 + $0x30] sm:$0xff] %v609_v40  }

</bundles_post_ra>
